<compile_context>
chip_gen: v5e
topology: v5e:2x2
jax: 0.10.0
libtpu: 0.0.40
codegen_flags: <defaults>
</compile_context>

<pallas_src>
import functools

import jax
import jax.numpy as jnp
from jax import lax
from jax.experimental import pallas as pl
from jax.experimental.pallas import tpu as pltpu


# ---------------------------------------------------------------------------
# Kernel: one grid step == the whole forward.
#   h = relu(x @ Wp_flat + bp)                  (B_pad, C*H)
#   y = h @ W_heads_bd + b_heads_bd             (B_pad, C*n_pad), lane-dense
#   relu only on lanes where (lane % n_pad) in [cf_start, cf_start + cf_size)
# ---------------------------------------------------------------------------
def _fused_decoder_kernel(x_ref, wp_ref, bp_ref, wh_ref, bh_ref, o_ref,
                          *, n_pad, cf_start, cf_size):
    x = x_ref[...]                                                    # (Bp, F)
    h = jnp.dot(x, wp_ref[...], preferred_element_type=jnp.float32)   # (Bp, C*H)
    h = jnp.maximum(h + bp_ref[...], 0.0)
    y = jnp.dot(h, wh_ref[...], preferred_element_type=jnp.float32)   # (Bp, C*n_pad)
    y = y + bh_ref[...]
    # Selective ReLU on the child-feature lanes only (single VPU select;
    # n_pad is a power of two so the mod is a cheap bitwise AND).
    lane = lax.broadcasted_iota(jnp.int32, y.shape, 1)
    lane_in_child = lane % n_pad
    relu_lanes = (lane_in_child >= cf_start) & (lane_in_child < cf_start + cf_size)
    o_ref[...] = jnp.where(relu_lanes, jnp.maximum(y, 0.0), y).astype(o_ref.dtype)


# ---------------------------------------------------------------------------
# Forward wrapper
# ---------------------------------------------------------------------------
def concat_child_decoder_forward(parent_feature, packed, *,
                                 max_child_num, hidden_size,
                                 num_sem, feature_size):
    """Mirrors ConcatChildDecoder.forward.

    Returns (child_feats, child_sem_logits, child_exists_logits) with shapes
    (B, C, F), (B, C, num_sem), (B, C, 1) — identical to the PyTorch module.
    """
    B, F = parent_feature.shape
    C, H = max_child_num, hidden_size
    n_pad = packed["w_heads_bd"].shape[1] // C
    cf_start = 1 + num_sem

    # Pad batch to a sublane multiple (rows < 8 cost the same as 8 anyway).
    B_pad = max(8, ((B + 7) // 8) * 8)
    x = parent_feature
    if B_pad != B:
        x = jnp.pad(x, ((0, B_pad - B), (0, 0)))

    kernel = functools.partial(_fused_decoder_kernel,
                               n_pad=n_pad, cf_start=cf_start,
                               cf_size=feature_size)

    flops = 2 * B_pad * (F * C * H + C * H * C * n_pad)
    bytes_accessed = 4 * (B_pad * F + F * C * H + C * H
                          + C * H * C * n_pad + C * n_pad
                          + B_pad * C * n_pad)

    out = pl.pallas_call(
        kernel,
        out_shape=jax.ShapeDtypeStruct((B_pad, C * n_pad), jnp.float32),
        grid_spec=pltpu.PrefetchScalarGridSpec(
            num_scalar_prefetch=0,
            grid=(1,),
            in_specs=[
                pl.BlockSpec((B_pad, F), lambda i: (0, 0)),          # x
                pl.BlockSpec((F, C * H), lambda i: (0, 0)),          # Wp_flat
                pl.BlockSpec((1, C * H), lambda i: (0, 0)),          # bp_flat
                pl.BlockSpec((C * H, C * n_pad), lambda i: (0, 0)),  # W_heads_bd
                pl.BlockSpec((1, C * n_pad), lambda i: (0, 0)),      # b_heads_bd
            ],
            out_specs=pl.BlockSpec((B_pad, C * n_pad), lambda i: (0, 0)),
        ),
        compiler_params=pltpu.CompilerParams(
            dimension_semantics=("arbitrary",)),
        cost_estimate=pl.CostEstimate(flops=flops, transcendentals=0,
                                      bytes_accessed=bytes_accessed),
    )(x,
      packed["w_parent_flat"], packed["b_parent_flat"],
      packed["w_heads_bd"], packed["b_heads_bd"])

    # Drop batch padding, free row-major view, drop padded lanes.
    out = out[:B].reshape(B, C, n_pad)
    child_exists_logits = out[:, :, 0:1]
    child_sem_logits = out[:, :, 1:1 + num_sem]
    child_feats = out[:, :, cf_start:cf_start + feature_size]
    return child_feats, child_sem_logits, child_exists_logits


# ---------------------------------------------------------------------------
# Parameter init (PyTorch nn.Linear-style) and kernel-layout packing
# ---------------------------------------------------------------------------
def init_params(key, feature_size, hidden_size, max_child_num, num_sem):
    """Plain (in_dim, out_dim) weights + 1-D biases, as in nn.Linear."""
    def linear(key, fan_in, fan_out):
        kw, kb = jax.random.split(key)
        bound = 1.0 / jnp.sqrt(float(fan_in))
        w = jax.random.uniform(kw, (fan_in, fan_out), jnp.float32, -bound, bound)
        b = jax.random.uniform(kb, (fan_out,), jnp.float32, -bound, bound)
        return w, b

    k1, k2, k3, k4 = jax.random.split(key, 4)
    w_parent, b_parent = linear(k1, feature_size, hidden_size * max_child_num)
    w_exists, b_exists = linear(k2, hidden_size, 1)
    w_sem, b_sem = linear(k3, hidden_size, num_sem)
    w_child, b_child = linear(k4, hidden_size, feature_size)
    return dict(w_parent=w_parent, b_parent=b_parent,
                w_exists=w_exists, b_exists=b_exists,
                w_sem=w_sem, b_sem=b_sem,
                w_child=w_child, b_child=b_child)


def pack_params(p, feature_size, hidden_size, max_child_num, num_sem):
    """Repack nn.Linear-style params into the kernel's TPU-friendly layout.

    NOTE: zero-padding of w_heads/b_heads to n_pad lanes is load-bearing — it
    keeps the padded output lanes benign (the wrapper also slices them off).
    """
    F, H, C = feature_size, hidden_size, max_child_num
    n_out = 1 + num_sem + F
    n_pad = ((n_out + 127) // 128) * 128

    # Parent projection stays flat: column c*H + j == (child c, hidden j),
    # exactly the layout the PyTorch .view(B, C, H) assumes.
    w_parent_flat = p["w_parent"]                       # (F, C*H)
    b_parent_flat = p["b_parent"].reshape(1, C * H)

    # Combined, lane-padded per-child heads weight, then block-diagonal over C.
    w_heads = jnp.concatenate([p["w_exists"], p["w_sem"], p["w_child"]], axis=1)
    w_heads = jnp.pad(w_heads, ((0, 0), (0, n_pad - n_out)))        # (H, n_pad)
    w_heads_bd = jnp.kron(jnp.eye(C, dtype=w_heads.dtype), w_heads)  # (C*H, C*n_pad)

    b_heads = jnp.concatenate([p["b_exists"], p["b_sem"], p["b_child"]])
    b_heads = jnp.pad(b_heads, (0, n_pad - n_out))                  # (n_pad,)
    b_heads_bd = jnp.tile(b_heads, C).reshape(1, C * n_pad)

    # TODO(synk): at production sizes store weights in bf16 (keep f32 accum).
    return dict(w_parent_flat=w_parent_flat, b_parent_flat=b_parent_flat,
                w_heads_bd=w_heads_bd, b_heads_bd=b_heads_bd)


# ---------------------------------------------------------------------------
# Main
# ---------------------------------------------------------------------------
if __name__ == "__main__":
    BATCH = 2
    FEATURE_SIZE = 32
    HIDDEN_SIZE = 32
    MAX_CHILD_NUM = 8
    NUM_SEM = 10  # stands in for Tree.num_sem

    key = jax.random.PRNGKey(0)
    k_params, k_x = jax.random.split(key)
    params = init_params(k_params, FEATURE_SIZE, HIDDEN_SIZE, MAX_CHILD_NUM, NUM_SEM)
    packed = pack_params(params, FEATURE_SIZE, HIDDEN_SIZE, MAX_CHILD_NUM, NUM_SEM)
    parent_feature = jax.random.normal(k_x, (BATCH, FEATURE_SIZE), jnp.float32)

    fwd = jax.jit(functools.partial(
        concat_child_decoder_forward,
        max_child_num=MAX_CHILD_NUM, hidden_size=HIDDEN_SIZE,
        num_sem=NUM_SEM, feature_size=FEATURE_SIZE))

    child_feats, child_sem_logits, child_exists_logits = fwd(parent_feature, packed)
    jax.block_until_ready((child_feats, child_sem_logits, child_exists_logits))

    # Pure-JAX reference of the PyTorch module (using the unpacked params).
    par_ref = jnp.maximum(parent_feature @ params["w_parent"] + params["b_parent"], 0.0)
    h_ref = par_ref.reshape(BATCH * MAX_CHILD_NUM, HIDDEN_SIZE)
    exists_ref = (h_ref @ params["w_exists"] + params["b_exists"]).reshape(
        BATCH, MAX_CHILD_NUM, 1)
    sem_ref = (h_ref @ params["w_sem"] + params["b_sem"]).reshape(
        BATCH, MAX_CHILD_NUM, NUM_SEM)
    cf_ref = jnp.maximum(h_ref @ params["w_child"] + params["b_child"], 0.0).reshape(
        BATCH, MAX_CHILD_NUM, FEATURE_SIZE)

    assert child_feats.shape == (BATCH, MAX_CHILD_NUM, FEATURE_SIZE)
    assert child_sem_logits.shape == (BATCH, MAX_CHILD_NUM, NUM_SEM)
    assert child_exists_logits.shape == (BATCH, MAX_CHILD_NUM, 1)
    assert jnp.allclose(child_feats, cf_ref, atol=1e-5)
    assert jnp.allclose(child_sem_logits, sem_ref, atol=1e-5)
    assert jnp.allclose(child_exists_logits, exists_ref, atol=1e-5)

    print("KERNEL_OK")
</pallas_src>

<mosaic_0001>
module attributes {stable_mosaic.version = 11 : i64} {
  func.func @_fused_decoder_kernel(%arg0: i32, %arg1: memref<8x32xf32, #tpu.memory_space<vmem>>, %arg2: memref<32x256xf32, #tpu.memory_space<vmem>>, %arg3: memref<1x256xf32, #tpu.memory_space<vmem>>, %arg4: memref<256x1024xf32, #tpu.memory_space<vmem>>, %arg5: memref<1x1024xf32, #tpu.memory_space<vmem>>, %arg6: memref<8x1024xf32, #tpu.memory_space<vmem>>) attributes {dimension_semantics = [#tpu.dimension_semantics<arbitrary>], iteration_bounds = array<i64: 1>, scalar_prefetch = 0 : i64, scratch_operands = 0 : i64, tpu.core_type = #tpu.core_type<tc>, window_params = [{pipeline_mode = #tpu.pipeline_mode<synchronous>, transform_indices = @transform_0, window_bounds = array<i64: 8, 32>}, {pipeline_mode = #tpu.pipeline_mode<synchronous>, transform_indices = @transform_1, window_bounds = array<i64: 32, 256>}, {pipeline_mode = #tpu.pipeline_mode<synchronous>, transform_indices = @transform_2, window_bounds = array<i64: 1, 256>}, {pipeline_mode = #tpu.pipeline_mode<synchronous>, transform_indices = @transform_3, window_bounds = array<i64: 256, 1024>}, {pipeline_mode = #tpu.pipeline_mode<synchronous>, transform_indices = @transform_4, window_bounds = array<i64: 1, 1024>}, {pipeline_mode = #tpu.pipeline_mode<synchronous>, transform_indices = @transform_5, window_bounds = array<i64: 8, 1024>}]} {
    %c0 = arith.constant 0 : index
    %c0_0 = arith.constant 0 : index
    %0 = vector.load %arg1[%c0, %c0_0] : memref<8x32xf32, #tpu.memory_space<vmem>>, vector<8x32xf32>
    %c0_1 = arith.constant 0 : index
    %c0_2 = arith.constant 0 : index
    %1 = vector.load %arg2[%c0_1, %c0_2] : memref<32x256xf32, #tpu.memory_space<vmem>>, vector<32x256xf32>
    %cst = arith.constant dense<0.000000e+00> : vector<8x256xf32>
    %2 = tpu.matmul %0, %1, %cst {dimension_numbers = #tpu.dot_dimension_numbers<[1], [0], [0], [1], [0, 0, 1, 1], [], []>} : vector<8x32xf32>, vector<32x256xf32>, vector<8x256xf32> -> vector<8x256xf32>
    %c0_3 = arith.constant 0 : index
    %c0_4 = arith.constant 0 : index
    %3 = vector.load %arg3[%c0_3, %c0_4] : memref<1x256xf32, #tpu.memory_space<vmem>>, vector<1x256xf32>
    %4 = vector.broadcast %3 : vector<1x256xf32> to vector<8x256xf32>
    %5 = arith.addf %2, %4 : vector<8x256xf32>
    %cst_5 = arith.constant 0.000000e+00 : f32
    %6 = vector.broadcast %cst_5 : f32 to vector<8x256xf32>
    %7 = arith.maximumf %5, %6 : vector<8x256xf32>
    %c0_6 = arith.constant 0 : index
    %c0_7 = arith.constant 0 : index
    %8 = vector.load %arg4[%c0_6, %c0_7] : memref<256x1024xf32, #tpu.memory_space<vmem>>, vector<256x1024xf32>
    %cst_8 = arith.constant dense<0.000000e+00> : vector<8x1024xf32>
    %9 = tpu.matmul %7, %8, %cst_8 {dimension_numbers = #tpu.dot_dimension_numbers<[1], [0], [0], [1], [0, 0, 1, 1], [], []>} : vector<8x256xf32>, vector<256x1024xf32>, vector<8x1024xf32> -> vector<8x1024xf32>
    %c0_9 = arith.constant 0 : index
    %c0_10 = arith.constant 0 : index
    %10 = vector.load %arg5[%c0_9, %c0_10] : memref<1x1024xf32, #tpu.memory_space<vmem>>, vector<1x1024xf32>
    %11 = vector.broadcast %10 : vector<1x1024xf32> to vector<8x1024xf32>
    %12 = arith.addf %9, %11 : vector<8x1024xf32>
    %13 = tpu.iota {dimensions = array<i32: 1>} : vector<8x1024xi32>
    %c128_i32 = arith.constant 128 : i32
    %c0_i32 = arith.constant 0 : i32
    %14 = arith.cmpi eq, %c128_i32, %c0_i32 : i32
    %c1_i32 = arith.constant 1 : i32
    %15 = arith.select %14, %c1_i32, %c128_i32 : i32
    %16 = vector.broadcast %15 : i32 to vector<8x1024xi32>
    %17 = arith.remsi %13, %16 : vector<8x1024xi32>
    %c0_i32_11 = arith.constant 0 : i32
    %18 = vector.broadcast %c0_i32_11 : i32 to vector<8x1024xi32>
    %19 = arith.cmpi ne, %17, %18 : vector<8x1024xi32>
    %c0_i32_12 = arith.constant 0 : i32
    %20 = vector.broadcast %c0_i32_12 : i32 to vector<8x1024xi32>
    %21 = arith.cmpi slt, %17, %20 : vector<8x1024xi32>
    %c0_i32_13 = arith.constant 0 : i32
    %22 = arith.cmpi slt, %15, %c0_i32_13 : i32
    %23 = vector.broadcast %22 : i1 to vector<8x1024xi1>
    %24 = vector.broadcast %23 : vector<8x1024xi1> to vector<8x1024xi1>
    %25 = arith.xori %21, %24 : vector<8x1024xi1>
    %26 = arith.andi %25, %19 : vector<8x1024xi1>
    %27 = vector.broadcast %15 : i32 to vector<8x1024xi32>
    %28 = arith.addi %17, %27 : vector<8x1024xi32>
    %29 = arith.select %26, %28, %17 : vector<8x1024xi1>, vector<8x1024xi32>
    %c11_i32 = arith.constant 11 : i32
    %30 = vector.broadcast %c11_i32 : i32 to vector<8x1024xi32>
    %31 = arith.cmpi sge, %29, %30 : vector<8x1024xi32>
    %c43_i32 = arith.constant 43 : i32
    %32 = vector.broadcast %c43_i32 : i32 to vector<8x1024xi32>
    %33 = arith.cmpi slt, %29, %32 : vector<8x1024xi32>
    %34 = arith.andi %31, %33 : vector<8x1024xi1>
    %cst_14 = arith.constant 0.000000e+00 : f32
    %35 = vector.broadcast %cst_14 : f32 to vector<8x1024xf32>
    %36 = arith.maximumf %12, %35 : vector<8x1024xf32>
    %37 = arith.select %34, %36, %12 : vector<8x1024xi1>, vector<8x1024xf32>
    %c0_15 = arith.constant 0 : index
    %c0_16 = arith.constant 0 : index
    %38 = vector.load %arg6[%c0_15, %c0_16] : memref<8x1024xf32, #tpu.memory_space<vmem>>, vector<8x1024xf32>
    tpu.vector_store %arg6[%c0_15, %c0_16], %37 {strides = array<i32>} : memref<8x1024xf32, #tpu.memory_space<vmem>>, vector<8x1024xf32>,
    return
  }
  func.func @transform_0(%arg0: i32) -> (i32, i32) {
    %c0_i32 = arith.constant 0 : i32
    %c0_i32_0 = arith.constant 0 : i32
    %c0_i32_1 = arith.constant 0 : i32
    return %c0_i32, %c0_i32_0 : i32, i32
  }
  func.func @transform_1(%arg0: i32) -> (i32, i32) {
    %c0_i32 = arith.constant 0 : i32
    %c0_i32_0 = arith.constant 0 : i32
    %c0_i32_1 = arith.constant 0 : i32
    return %c0_i32, %c0_i32_0 : i32, i32
  }
  func.func @transform_2(%arg0: i32) -> (i32, i32) {
    %c0_i32 = arith.constant 0 : i32
    %c0_i32_0 = arith.constant 0 : i32
    %c0_i32_1 = arith.constant 0 : i32
    return %c0_i32, %c0_i32_0 : i32, i32
  }
  func.func @transform_3(%arg0: i32) -> (i32, i32) {
    %c0_i32 = arith.constant 0 : i32
    %c0_i32_0 = arith.constant 0 : i32
    %c0_i32_1 = arith.constant 0 : i32
    return %c0_i32, %c0_i32_0 : i32, i32
  }
  func.func @transform_4(%arg0: i32) -> (i32, i32) {
    %c0_i32 = arith.constant 0 : i32
    %c0_i32_0 = arith.constant 0 : i32
    %c0_i32_1 = arith.constant 0 : i32
    return %c0_i32, %c0_i32_0 : i32, i32
  }
  func.func @transform_5(%arg0: i32) -> (i32, i32) {
    %c0_i32 = arith.constant 0 : i32
    %c0_i32_0 = arith.constant 0 : i32
    %c0_i32_1 = arith.constant 0 : i32
    return %c0_i32, %c0_i32_0 : i32, i32
  }
}

</mosaic_0001>

<bundles_post_ra>
// kernel: concat_child_decoder_forward.1
= control target key start
LH: loop header
LB: loop body
LE: loop exit
PB: predicated region body
PF: predicated region fallthrough
CT: control target
= control target key end

     0   :  { %10 = vsyncpa [#allocation3], 0  ;;  %s1042_s0 = inlined_call_operand.vmem [shape: f32[8,32], index: 0, kind: input, shape index: {}]   ;;  %s1043_s1 = inlined_call_operand.hbm [shape: f32[32,256], index: 1, kind: input, shape index: {}]   ;;  %s1044_s2 = inlined_call_operand.vmem [shape: f32[1,256], index: 2, kind: input, shape index: {}]   ;;  %s1045_s3 = inlined_call_operand.hbm [shape: f32[256,1024], index: 3, kind: input, shape index: {}]   ;;  %s1046_s4 = inlined_call_operand.vmem [shape: f32[1,1024], index: 4, kind: input, shape index: {}]   ;;  %s1047_s5 = inlined_call_operand.vmem [shape: f32[8,1024], index: 5, kind: output, shape index: {}]  }
   0x1   :  { %s18_s20 = sshll.u32 %s1043_s1, 4  ;;  %s19_s20 = int_to_ptr.hbm [resolvable:$true] %s18_s20 }
   0x2   :  { %11 = vsyncpa [#allocation5], 0  ;;  %s926_s21 = smov [#allocation2]   ;;  %s33_s25 = sshll.u32 %s1045_s3, 4  ;;  %s34_s25 = int_to_ptr.hbm [resolvable:$true] %s33_s25 }
   0x3   :  { %s20_s22 = sshll.u32 %s926_s21, 4  ;;  %s927_s26 = smov 256   ;;  %s21_s22 = int_to_ptr.vmem [resolvable:$true] %s20_s22 }
   0x4   :  { %s928_s27 = smov 16   ;;  %s929_s28 = smov [#allocation4]  }
   0x5   :  { %26 = dma.hbm_to_vmem [thread:$0]  %s19_s20, 1024, %s21_s22, [#allocation3], %s927_s26, %s927_s26, %s928_s27  }
   0x6   :  { %s35_s29 = sshll.u32 %s929_s28, 4  ;;  %s930_s30 = smov 1024   ;;  %s36_s29 = int_to_ptr.vmem [resolvable:$true] %s35_s29 }
   0x7   :  { %s931_s6 = smov 64  }
   0x8   :  { %41 = dma.hbm_to_vmem [thread:$0]  %s34_s25, 32768, %s36_s29, [#allocation5], %s930_s30, %s930_s30, %s931_s6  }
   0x9   :  { %922 = dma.done.wait [#allocation3], 1024  }
   0xa   :  { %923 = vsyncadd [#allocation3], 4294966272 }
   0xb   :  { %924 = dma.done.wait [#allocation5], 32768  }
   0xc   :  { %925 = vsyncadd [#allocation5], 4294934528  ;;  %v59_v0 = vld [vmem:[#allocation2 + $0x30] sm:$0xff]  ;;  %v60_v1 = vld [vmem:[#allocation2 + $0x38] sm:$0xff]  ;;  %vm67_vm0 = vcmask 261120  }
   0xd   :  { %v57_v2 = vld [vmem:[#allocation2 + $0x20] sm:$0xff]  ;;  %83 = vmatpush.msra.mxu0 %v59_v0  ;;  %103 = vmatpush.msra.mxu1 %v60_v1  ;;  %v58_v3 = vld [vmem:[#allocation2 + $0x28] sm:$0xff]  ;;  %v55_v4 = vld [vmem:[#allocation2 + $0x10] sm:$0xff] }
   0xe   :  { %v56_v5 = vld [vmem:[#allocation2 + $0x18] sm:$0xff]  ;;  %v53_v6 = vld [vmem:[#allocation2] sm:$0xff]  ;;  %v54_v9 = vld [vmem:[#allocation2 + $0x8] sm:$0xff] }
   0xf   :  { %84 = vmatpush.msra.mxu0 %v57_v2  ;;  %104 = vmatpush.msra.mxu1 %v58_v3  ;;  %v233_v7 = vld [vmem:[#allocation4 + $0x3c0] sm:$0xff]  ;;  %v234_v13 = vld [vmem:[#allocation4 + $0x3c8] sm:$0xff] }
  0x10   :  { %v361_v8 = vld [vmem:[#allocation4 + $0x7c0] sm:$0xff]  ;;  %387 = vmatpush.msra.mxu2 %v233_v7  ;;  %v362_v14 = vld [vmem:[#allocation4 + $0x7c8] sm:$0xff]  ;;  %v235_v7 = vld [vmem:[#allocation4 + $0x3d0] sm:$0xff] }
  0x11   :  { %407 = vmatpush.msra.mxu3 %v361_v8  ;;  %v225_v10 = vld [vmem:[#allocation4 + $0x380] sm:$0xff]  ;;  %85 = vmatpush.msra.mxu0 %v55_v4  ;;  %v226_v17 = vld [vmem:[#allocation4 + $0x388] sm:$0xff]  ;;  %v363_v8 = vld [vmem:[#allocation4 + $0x7d0] sm:$0xff] }
  0x12   :  { %v353_v11 = vld [vmem:[#allocation4 + $0x780] sm:$0xff]  ;;  %105 = vmatpush.msra.mxu1 %v56_v5  ;;  %388 = vmatpush.msra.mxu2 %v225_v10  ;;  %v354_v18 = vld [vmem:[#allocation4 + $0x788] sm:$0xff] }
  0x13   :  { %v52_v12 = vld [vmem:[%s1042_s0] sm:$0xff]  ;;  %408 = vmatpush.msra.mxu3 %v353_v11  ;;  %86 = vmatpush.msra.mxu0 %v53_v6  ;;  %v218_v21 = vld [vmem:[#allocation4 + $0x348] sm:$0xff]  ;;  %v236_v11 = vld [vmem:[#allocation4 + $0x3d8] sm:$0xff] }
  0x14   :  { %106 = vmatpush.msra.mxu1 %v54_v9  ;;  %v217_v15 = vld [vmem:[#allocation4 + $0x340] sm:$0xff]  ;;  %866 = vmatmul.msk.f32.vlgmr.msra.gmra.mxu0 %vm67_vm0, %v52_v12  ;;  %v346_v22 = vld [vmem:[#allocation4 + $0x748] sm:$0xff] }
  0x15   :  { %v345_v16 = vld [vmem:[#allocation4 + $0x740] sm:$0xff]  ;;  %867 = vmatmul.msk.f32.vlgmr.msra.gmra.mxu1 %vm67_vm0, %v52_v12  ;;  %427 = vmatpush.msrb.mxu0 %v234_v13  ;;  %v210_v25 = vld [vmem:[#allocation4 + $0x308] sm:$0xff]  ;;  %v364_v12 = vld [vmem:[#allocation4 + $0x7d8] sm:$0xff] }
  0x16   :  { %447 = vmatpush.msrb.mxu1 %v362_v14  ;;  %v209_v19 = vld [vmem:[#allocation4 + $0x300] sm:$0xff]  ;;  %389 = vmatpush.msra.mxu2 %v217_v15  ;;  %v338_v26 = vld [vmem:[#allocation4 + $0x708] sm:$0xff]  ;;  %v227_v13 = vld [vmem:[#allocation4 + $0x390] sm:$0xff] }
  0x17   :  { %v337_v20 = vld [vmem:[#allocation4 + $0x700] sm:$0xff]  ;;  %409 = vmatpush.msra.mxu3 %v345_v16  ;;  %428 = vmatpush.msrb.mxu0 %v226_v17  ;;  %v202_v29 = vld [vmem:[#allocation4 + $0x2c8] sm:$0xff]  ;;  %v355_v14 = vld [vmem:[#allocation4 + $0x790] sm:$0xff] }
  0x18   :  { %448 = vmatpush.msrb.mxu1 %v354_v18  ;;  %v201_v23 = vld [vmem:[#allocation4 + $0x2c0] sm:$0xff]  ;;  %390 = vmatpush.msra.mxu2 %v209_v19  ;;  %v330_v30 = vld [vmem:[#allocation4 + $0x6c8] sm:$0xff]  ;;  %v228_v15 = vld [vmem:[#allocation4 + $0x398] sm:$0xff] }
  0x19   :  { %v329_v24 = vld [vmem:[#allocation4 + $0x6c0] sm:$0xff]  ;;  %410 = vmatpush.msra.mxu3 %v337_v20  ;;  %429 = vmatpush.msrb.mxu0 %v218_v21  ;;  %v194_v33 = vld [vmem:[#allocation4 + $0x288] sm:$0xff]  ;;  %v356_v16 = vld [vmem:[#allocation4 + $0x798] sm:$0xff] }
  0x1a   :  { %449 = vmatpush.msrb.mxu1 %v346_v22  ;;  %v193_v27 = vld [vmem:[#allocation4 + $0x280] sm:$0xff]  ;;  %391 = vmatpush.msra.mxu2 %v201_v23  ;;  %v322_v34 = vld [vmem:[#allocation4 + $0x688] sm:$0xff]  ;;  %v219_v17 = vld [vmem:[#allocation4 + $0x350] sm:$0xff] }
  0x1b   :  { %v321_v28 = vld [vmem:[#allocation4 + $0x680] sm:$0xff]  ;;  %411 = vmatpush.msra.mxu3 %v329_v24  ;;  %430 = vmatpush.msrb.mxu0 %v210_v25  ;;  %v186_v37 = vld [vmem:[#allocation4 + $0x248] sm:$0xff]  ;;  %v347_v18 = vld [vmem:[#allocation4 + $0x750] sm:$0xff] }
  0x1c   :  { %450 = vmatpush.msrb.mxu1 %v338_v26  ;;  %v185_v31 = vld [vmem:[#allocation4 + $0x240] sm:$0xff]  ;;  %392 = vmatpush.msra.mxu2 %v193_v27  ;;  %v314_v38 = vld [vmem:[#allocation4 + $0x648] sm:$0xff]  ;;  %v220_v19 = vld [vmem:[#allocation4 + $0x358] sm:$0xff] }
  0x1d   :  { %v313_v32 = vld [vmem:[#allocation4 + $0x640] sm:$0xff]  ;;  %412 = vmatpush.msra.mxu3 %v321_v28  ;;  %431 = vmatpush.msrb.mxu0 %v202_v29  ;;  %v178_v41 = vld [vmem:[#allocation4 + $0x208] sm:$0xff]  ;;  %v348_v20 = vld [vmem:[#allocation4 + $0x758] sm:$0xff] }
  0x1e   :  { %451 = vmatpush.msrb.mxu1 %v330_v30  ;;  %v177_v35 = vld [vmem:[#allocation4 + $0x200] sm:$0xff]  ;;  %393 = vmatpush.msra.mxu2 %v185_v31  ;;  %v306_v42 = vld [vmem:[#allocation4 + $0x608] sm:$0xff]  ;;  %v211_v21 = vld [vmem:[#allocation4 + $0x310] sm:$0xff] }
  0x1f   :  { %v305_v36 = vld [vmem:[#allocation4 + $0x600] sm:$0xff]  ;;  %413 = vmatpush.msra.mxu3 %v313_v32  ;;  %432 = vmatpush.msrb.mxu0 %v194_v33  ;;  %v170_v45 = vld [vmem:[#allocation4 + $0x1c8] sm:$0xff]  ;;  %v339_v22 = vld [vmem:[#allocation4 + $0x710] sm:$0xff] }
  0x20   :  { %452 = vmatpush.msrb.mxu1 %v322_v34  ;;  %v169_v39 = vld [vmem:[#allocation4 + $0x1c0] sm:$0xff]  ;;  %394 = vmatpush.msra.mxu2 %v177_v35  ;;  %v298_v46 = vld [vmem:[#allocation4 + $0x5c8] sm:$0xff]  ;;  %v212_v23 = vld [vmem:[#allocation4 + $0x318] sm:$0xff] }
  0x21   :  { %v297_v40 = vld [vmem:[#allocation4 + $0x5c0] sm:$0xff]  ;;  %414 = vmatpush.msra.mxu3 %v305_v36  ;;  %433 = vmatpush.msrb.mxu0 %v186_v37  ;;  %v162_v49 = vld [vmem:[#allocation4 + $0x188] sm:$0xff]  ;;  %v340_v24 = vld [vmem:[#allocation4 + $0x718] sm:$0xff] }
  0x22   :  { %453 = vmatpush.msrb.mxu1 %v314_v38  ;;  %v161_v43 = vld [vmem:[#allocation4 + $0x180] sm:$0xff]  ;;  %395 = vmatpush.msra.mxu2 %v169_v39  ;;  %v290_v50 = vld [vmem:[#allocation4 + $0x588] sm:$0xff]  ;;  %v203_v25 = vld [vmem:[#allocation4 + $0x2d0] sm:$0xff] }
  0x23   :  { %v289_v44 = vld [vmem:[#allocation4 + $0x580] sm:$0xff]  ;;  %415 = vmatpush.msra.mxu3 %v297_v40  ;;  %434 = vmatpush.msrb.mxu0 %v178_v41  ;;  %v154_v53 = vld [vmem:[#allocation4 + $0x148] sm:$0xff]  ;;  %v331_v26 = vld [vmem:[#allocation4 + $0x6d0] sm:$0xff] }
  0x24   :  { %454 = vmatpush.msrb.mxu1 %v306_v42  ;;  %v153_v47 = vld [vmem:[#allocation4 + $0x140] sm:$0xff]  ;;  %396 = vmatpush.msra.mxu2 %v161_v43  ;;  %v282_v54 = vld [vmem:[#allocation4 + $0x548] sm:$0xff]  ;;  %v204_v27 = vld [vmem:[#allocation4 + $0x2d8] sm:$0xff] }
  0x25   :  { %v281_v48 = vld [vmem:[#allocation4 + $0x540] sm:$0xff]  ;;  %416 = vmatpush.msra.mxu3 %v289_v44  ;;  %435 = vmatpush.msrb.mxu0 %v170_v45  ;;  %v146_v57 = vld [vmem:[#allocation4 + $0x108] sm:$0xff]  ;;  %v332_v28 = vld [vmem:[#allocation4 + $0x6d8] sm:$0xff] }
  0x26   :  { %455 = vmatpush.msrb.mxu1 %v298_v46  ;;  %v145_v51 = vld [vmem:[#allocation4 + $0x100] sm:$0xff]  ;;  %397 = vmatpush.msra.mxu2 %v153_v47  ;;  %v274_v58 = vld [vmem:[#allocation4 + $0x508] sm:$0xff]  ;;  %v195_v29 = vld [vmem:[#allocation4 + $0x290] sm:$0xff] }
  0x27   :  { %v273_v52 = vld [vmem:[#allocation4 + $0x500] sm:$0xff]  ;;  %417 = vmatpush.msra.mxu3 %v281_v48  ;;  %436 = vmatpush.msrb.mxu0 %v162_v49  ;;  %v138_v61 = vld [vmem:[#allocation4 + $0xc8] sm:$0xff]  ;;  %v323_v30 = vld [vmem:[#allocation4 + $0x690] sm:$0xff] }
  0x28   :  { %456 = vmatpush.msrb.mxu1 %v290_v50  ;;  %v137_v55 = vld [vmem:[#allocation4 + $0xc0] sm:$0xff]  ;;  %398 = vmatpush.msra.mxu2 %v145_v51  ;;  %v266_v62 = vld [vmem:[#allocation4 + $0x4c8] sm:$0xff]  ;;  %v196_v31 = vld [vmem:[#allocation4 + $0x298] sm:$0xff] }
  0x29   :  { %v265_v56 = vld [vmem:[#allocation4 + $0x4c0] sm:$0xff]  ;;  %418 = vmatpush.msra.mxu3 %v273_v52  ;;  %437 = vmatpush.msrb.mxu0 %v154_v53  ;;  %v130_v1 = vld [vmem:[#allocation4 + $0x88] sm:$0xff]  ;;  %v324_v32 = vld [vmem:[#allocation4 + $0x698] sm:$0xff] }
  0x2a   :  { %457 = vmatpush.msrb.mxu1 %v282_v54  ;;  %v129_v59 = vld [vmem:[#allocation4 + $0x80] sm:$0xff]  ;;  %399 = vmatpush.msra.mxu2 %v137_v55  ;;  %v258_v2 = vld [vmem:[#allocation4 + $0x488] sm:$0xff]  ;;  %v187_v33 = vld [vmem:[#allocation4 + $0x250] sm:$0xff] }
  0x2b   :  { %v257_v60 = vld [vmem:[#allocation4 + $0x480] sm:$0xff]  ;;  %419 = vmatpush.msra.mxu3 %v265_v56  ;;  %438 = vmatpush.msrb.mxu0 %v146_v57  ;;  %v122_v5 = vld [vmem:[#allocation4 + $0x48] sm:$0xff]  ;;  %v315_v34 = vld [vmem:[#allocation4 + $0x650] sm:$0xff] }
  0x2c   :  { %458 = vmatpush.msrb.mxu1 %v274_v58  ;;  %v121_v63 = vld [vmem:[#allocation4 + $0x40] sm:$0xff]  ;;  %400 = vmatpush.msra.mxu2 %v129_v59  ;;  %v250_v6 = vld [vmem:[#allocation4 + $0x448] sm:$0xff]  ;;  %v188_v35 = vld [vmem:[#allocation4 + $0x258] sm:$0xff] }
  0x2d   :  { %v249_v0 = vld [vmem:[#allocation4 + $0x440] sm:$0xff]  ;;  %420 = vmatpush.msra.mxu3 %v257_v60  ;;  %439 = vmatpush.msrb.mxu0 %v138_v61  ;;  %v114_v9 = vld [vmem:[#allocation4 + $0x8] sm:$0xff]  ;;  %v316_v36 = vld [vmem:[#allocation4 + $0x658] sm:$0xff] }
  0x2e   :  { %459 = vmatpush.msrb.mxu1 %v266_v62  ;;  %v113_v3 = vld [vmem:[#allocation4] sm:$0xff]  ;;  %401 = vmatpush.msra.mxu2 %v121_v63  ;;  %v242_v10 = vld [vmem:[#allocation4 + $0x408] sm:$0xff]  ;;  %v179_v37 = vld [vmem:[#allocation4 + $0x210] sm:$0xff] }
  0x2f   :  { %v241_v4 = vld [vmem:[#allocation4 + $0x400] sm:$0xff]  ;;  %421 = vmatpush.msra.mxu3 %v249_v0  ;;  %440 = vmatpush.msrb.mxu0 %v130_v1  ;;  %v307_v38 = vld [vmem:[#allocation4 + $0x610] sm:$0xff]  ;;  %v180_v39 = vld [vmem:[#allocation4 + $0x218] sm:$0xff] }
  0x30   :  { %460 = vmatpush.msrb.mxu1 %v258_v2  ;;  %402 = vmatpush.msra.mxu2 %v113_v3  ;;  %v308_v40 = vld [vmem:[#allocation4 + $0x618] sm:$0xff]  ;;  %v171_v41 = vld [vmem:[#allocation4 + $0x1d0] sm:$0xff] }
  0x31   :  { %422 = vmatpush.msra.mxu3 %v241_v4  ;;  %441 = vmatpush.msrb.mxu0 %v122_v5  ;;  %v299_v42 = vld [vmem:[#allocation4 + $0x5d0] sm:$0xff]  ;;  %v172_v43 = vld [vmem:[#allocation4 + $0x1d8] sm:$0xff] }
  0x32   :  { %461 = vmatpush.msrb.mxu1 %v250_v6  ;;  %467 = vmatpush.msrb.mxu2 %v235_v7  ;;  %v300_v44 = vld [vmem:[#allocation4 + $0x5d8] sm:$0xff]  ;;  %v163_v45 = vld [vmem:[#allocation4 + $0x190] sm:$0xff] }
  0x33   :  { %487 = vmatpush.msrb.mxu3 %v363_v8  ;;  %442 = vmatpush.msrb.mxu0 %v114_v9  ;;  %v291_v46 = vld [vmem:[#allocation4 + $0x590] sm:$0xff]  ;;  %v164_v47 = vld [vmem:[#allocation4 + $0x198] sm:$0xff]  ;;  %v61_v9 = vld [vmem:[%s1044_s2] sm:$0x3] }
  0x34   :  { %462 = vmatpush.msrb.mxu1 %v242_v10  ;;  %468 = vmatpush.msrb.mxu2 %v227_v13  ;;  %v292_v48 = vld [vmem:[#allocation4 + $0x598] sm:$0xff]  ;;  %v155_v49 = vld [vmem:[#allocation4 + $0x150] sm:$0xff]  ;;  %v63_v10 = vperm.slane %v61_v9, 0 }
  0x35   :  { %507 = vmatpush.msra.mxu0 %v236_v11  ;;  %488 = vmatpush.msrb.mxu3 %v355_v14  ;;  %v283_v50 = vld [vmem:[#allocation4 + $0x550] sm:$0xff]  ;;  %v156_v51 = vld [vmem:[#allocation4 + $0x158] sm:$0xff]  ;;  %v64_v11 = vperm.slane %v61_v9, 1  ;;  %v262_v9 = vld [vmem:[#allocation4 + $0x4a8] sm:$0xff] }
  0x36   :  { %527 = vmatpush.msra.mxu1 %v364_v12  ;;  %469 = vmatpush.msrb.mxu2 %v219_v17  ;;  %v284_v52 = vld [vmem:[#allocation4 + $0x558] sm:$0xff]  ;;  %v147_v53 = vld [vmem:[#allocation4 + $0x110] sm:$0xff] }
  0x37   :  { %508 = vmatpush.msra.mxu0 %v228_v15  ;;  %489 = vmatpush.msrb.mxu3 %v347_v18  ;;  %v275_v54 = vld [vmem:[#allocation4 + $0x510] sm:$0xff]  ;;  %v148_v55 = vld [vmem:[#allocation4 + $0x118] sm:$0xff]  ;;  %v237_v18 = vld [vmem:[#allocation4 + $0x3e0] sm:$0xff] }
  0x38   :  { %528 = vmatpush.msra.mxu1 %v356_v16  ;;  %470 = vmatpush.msrb.mxu2 %v211_v21  ;;  %v276_v56 = vld [vmem:[#allocation4 + $0x518] sm:$0xff]  ;;  %v139_v57 = vld [vmem:[#allocation4 + $0xd0] sm:$0xff]  ;;  %v366_v21 = vld [vmem:[#allocation4 + $0x7e8] sm:$0xff] }
  0x39   :  { %509 = vmatpush.msra.mxu0 %v220_v19  ;;  %490 = vmatpush.msrb.mxu3 %v339_v22  ;;  %v267_v58 = vld [vmem:[#allocation4 + $0x4d0] sm:$0xff]  ;;  %v140_v59 = vld [vmem:[#allocation4 + $0xd8] sm:$0xff]  ;;  %v365_v19 = vld [vmem:[#allocation4 + $0x7e0] sm:$0xff] }
  0x3a   :  { %529 = vmatpush.msra.mxu1 %v348_v20  ;;  %471 = vmatpush.msrb.mxu2 %v203_v25  ;;  %v268_v60 = vld [vmem:[#allocation4 + $0x4d8] sm:$0xff]  ;;  %v131_v61 = vld [vmem:[#allocation4 + $0x90] sm:$0xff]  ;;  %v238_v20 = vld [vmem:[#allocation4 + $0x3e8] sm:$0xff] }
  0x3b   :  { %510 = vmatpush.msra.mxu0 %v212_v23  ;;  %491 = vmatpush.msrb.mxu3 %v331_v26  ;;  %v259_v62 = vld [vmem:[#allocation4 + $0x490] sm:$0xff]  ;;  %v132_v63 = vld [vmem:[#allocation4 + $0x98] sm:$0xff]  ;;  %v229_v22 = vld [vmem:[#allocation4 + $0x3a0] sm:$0xff] }
  0x3c   :  { %530 = vmatpush.msra.mxu1 %v340_v24  ;;  %472 = vmatpush.msrb.mxu2 %v195_v29  ;;  %v260_v0 = vld [vmem:[#allocation4 + $0x498] sm:$0xff]  ;;  %v123_v1 = vld [vmem:[#allocation4 + $0x50] sm:$0xff]  ;;  %v357_v23 = vld [vmem:[#allocation4 + $0x7a0] sm:$0xff] }
  0x3d   :  { %511 = vmatpush.msra.mxu0 %v204_v27  ;;  %492 = vmatpush.msrb.mxu3 %v323_v30  ;;  %v251_v2 = vld [vmem:[#allocation4 + $0x450] sm:$0xff]  ;;  %v124_v3 = vld [vmem:[#allocation4 + $0x58] sm:$0xff]  ;;  %v230_v24 = vld [vmem:[#allocation4 + $0x3a8] sm:$0xff] }
  0x3e   :  { %531 = vmatpush.msra.mxu1 %v332_v28  ;;  %473 = vmatpush.msrb.mxu2 %v187_v33  ;;  %v252_v4 = vld [vmem:[#allocation4 + $0x458] sm:$0xff]  ;;  %v115_v5 = vld [vmem:[#allocation4 + $0x10] sm:$0xff]  ;;  %v358_v25 = vld [vmem:[#allocation4 + $0x7a8] sm:$0xff] }
  0x3f   :  { %512 = vmatpush.msra.mxu0 %v196_v31  ;;  %493 = vmatpush.msrb.mxu3 %v315_v34  ;;  %v243_v6 = vld [vmem:[#allocation4 + $0x410] sm:$0xff]  ;;  %v116_v7 = vld [vmem:[#allocation4 + $0x18] sm:$0xff]  ;;  %v221_v26 = vld [vmem:[#allocation4 + $0x360] sm:$0xff] }
  0x40   :  { %532 = vmatpush.msra.mxu1 %v324_v32  ;;  %474 = vmatpush.msrb.mxu2 %v179_v37  ;;  %v244_v8 = vld [vmem:[#allocation4 + $0x418] sm:$0xff]  ;;  %v349_v27 = vld [vmem:[#allocation4 + $0x760] sm:$0xff]  ;;  %v222_v28 = vld [vmem:[#allocation4 + $0x368] sm:$0xff] }
  0x41   :  { %513 = vmatpush.msra.mxu0 %v188_v35  ;;  %494 = vmatpush.msrb.mxu3 %v307_v38  ;;  %v350_v29 = vld [vmem:[#allocation4 + $0x768] sm:$0xff]  ;;  %v213_v30 = vld [vmem:[#allocation4 + $0x320] sm:$0xff] }
  0x42   :  { %533 = vmatpush.msra.mxu1 %v316_v36  ;;  %475 = vmatpush.msrb.mxu2 %v171_v41  ;;  %v341_v31 = vld [vmem:[#allocation4 + $0x720] sm:$0xff]  ;;  %v214_v32 = vld [vmem:[#allocation4 + $0x328] sm:$0xff] }
  0x43   :  { %514 = vmatpush.msra.mxu0 %v180_v39  ;;  %495 = vmatpush.msrb.mxu3 %v299_v42  ;;  %v342_v33 = vld [vmem:[#allocation4 + $0x728] sm:$0xff]  ;;  %v205_v34 = vld [vmem:[#allocation4 + $0x2e0] sm:$0xff] }
  0x44   :  { %534 = vmatpush.msra.mxu1 %v308_v40  ;;  %476 = vmatpush.msrb.mxu2 %v163_v45  ;;  %v333_v35 = vld [vmem:[#allocation4 + $0x6e0] sm:$0xff]  ;;  %v206_v36 = vld [vmem:[#allocation4 + $0x2e8] sm:$0xff] }
  0x45   :  { %515 = vmatpush.msra.mxu0 %v172_v43  ;;  %496 = vmatpush.msrb.mxu3 %v291_v46  ;;  %v334_v37 = vld [vmem:[#allocation4 + $0x6e8] sm:$0xff]  ;;  %v197_v38 = vld [vmem:[#allocation4 + $0x2a0] sm:$0xff] }
  0x46   :  { %535 = vmatpush.msra.mxu1 %v300_v44  ;;  %477 = vmatpush.msrb.mxu2 %v155_v49  ;;  %v325_v39 = vld [vmem:[#allocation4 + $0x6a0] sm:$0xff]  ;;  %v198_v40 = vld [vmem:[#allocation4 + $0x2a8] sm:$0xff] }
  0x47   :  { %516 = vmatpush.msra.mxu0 %v164_v47  ;;  %497 = vmatpush.msrb.mxu3 %v283_v50  ;;  %v326_v41 = vld [vmem:[#allocation4 + $0x6a8] sm:$0xff]  ;;  %v189_v42 = vld [vmem:[#allocation4 + $0x260] sm:$0xff] }
  0x48   :  { %536 = vmatpush.msra.mxu1 %v292_v48  ;;  %478 = vmatpush.msrb.mxu2 %v147_v53  ;;  %v317_v43 = vld [vmem:[#allocation4 + $0x660] sm:$0xff]  ;;  %v190_v44 = vld [vmem:[#allocation4 + $0x268] sm:$0xff] }
  0x49   :  { %517 = vmatpush.msra.mxu0 %v156_v51  ;;  %498 = vmatpush.msrb.mxu3 %v275_v54  ;;  %v318_v45 = vld [vmem:[#allocation4 + $0x668] sm:$0xff]  ;;  %v181_v46 = vld [vmem:[#allocation4 + $0x220] sm:$0xff] }
  0x4a   :  { %537 = vmatpush.msra.mxu1 %v284_v52  ;;  %479 = vmatpush.msrb.mxu2 %v139_v57  ;;  %v309_v47 = vld [vmem:[#allocation4 + $0x620] sm:$0xff]  ;;  %v182_v48 = vld [vmem:[#allocation4 + $0x228] sm:$0xff] }
  0x4b   :  { %518 = vmatpush.msra.mxu0 %v148_v55  ;;  %499 = vmatpush.msrb.mxu3 %v267_v58  ;;  %v310_v49 = vld [vmem:[#allocation4 + $0x628] sm:$0xff]  ;;  %v173_v50 = vld [vmem:[#allocation4 + $0x1e0] sm:$0xff] }
  0x4c   :  { %538 = vmatpush.msra.mxu1 %v276_v56  ;;  %480 = vmatpush.msrb.mxu2 %v131_v61  ;;  %v301_v51 = vld [vmem:[#allocation4 + $0x5e0] sm:$0xff]  ;;  %v174_v52 = vld [vmem:[#allocation4 + $0x1e8] sm:$0xff] }
  0x4d   :  { %519 = vmatpush.msra.mxu0 %v140_v59  ;;  %500 = vmatpush.msrb.mxu3 %v259_v62  ;;  %v302_v53 = vld [vmem:[#allocation4 + $0x5e8] sm:$0xff]  ;;  %v165_v54 = vld [vmem:[#allocation4 + $0x1a0] sm:$0xff] }
  0x4e   :  { %539 = vmatpush.msra.mxu1 %v268_v60  ;;  %481 = vmatpush.msrb.mxu2 %v123_v1  ;;  %v293_v55 = vld [vmem:[#allocation4 + $0x5a0] sm:$0xff]  ;;  %v166_v56 = vld [vmem:[#allocation4 + $0x1a8] sm:$0xff] }
  0x4f   :  { %520 = vmatpush.msra.mxu0 %v132_v63  ;;  %501 = vmatpush.msrb.mxu3 %v251_v2  ;;  %v294_v57 = vld [vmem:[#allocation4 + $0x5a8] sm:$0xff]  ;;  %v157_v58 = vld [vmem:[#allocation4 + $0x160] sm:$0xff] }
  0x50   :  { %540 = vmatpush.msra.mxu1 %v260_v0  ;;  %482 = vmatpush.msrb.mxu2 %v115_v5  ;;  %v285_v59 = vld [vmem:[#allocation4 + $0x560] sm:$0xff]  ;;  %v158_v60 = vld [vmem:[#allocation4 + $0x168] sm:$0xff] }
  0x51   :  { %521 = vmatpush.msra.mxu0 %v124_v3  ;;  %502 = vmatpush.msrb.mxu3 %v243_v6  ;;  %v286_v61 = vld [vmem:[#allocation4 + $0x568] sm:$0xff]  ;;  %v149_v62 = vld [vmem:[#allocation4 + $0x120] sm:$0xff] }
  0x52   :  { %541 = vmatpush.msra.mxu1 %v252_v4  ;;  %v277_v63 = vld [vmem:[#allocation4 + $0x520] sm:$0xff]  ;;  %v150_v0 = vld [vmem:[#allocation4 + $0x128] sm:$0xff] }
  0x53   :  { %522 = vmatpush.msra.mxu0 %v116_v7  ;;  %v278_v1 = vld [vmem:[#allocation4 + $0x528] sm:$0xff]  ;;  %v141_v2 = vld [vmem:[#allocation4 + $0xe0] sm:$0xff] }
  0x54   :  { %542 = vmatpush.msra.mxu1 %v244_v8  ;;  %v269_v3 = vld [vmem:[#allocation4 + $0x4e0] sm:$0xff]  ;;  %v142_v4 = vld [vmem:[#allocation4 + $0xe8] sm:$0xff] }
  0x55   :  { %v270_v5 = vld [vmem:[#allocation4 + $0x4e8] sm:$0xff]  ;;  %v133_v6 = vld [vmem:[#allocation4 + $0xa0] sm:$0xff] }
  0x56   :  { %v261_v7 = vld [vmem:[#allocation4 + $0x4a0] sm:$0xff]  ;;  %v134_v8 = vld [vmem:[#allocation4 + $0xa8] sm:$0xff] }
  0x91   :  { %v88_v12 = vpop.f32.mrf.mxu0 }
  0x92   :  { %v108_v13 = vpop.f32.mrf.mxu1  ;;  %v89_v14 = vadd.f32 %v88_v12, %v63_v10  ;;  %v125_v10 = vld [vmem:[#allocation4 + $0x60] sm:$0xff]  ;;  %v126_v12 = vld [vmem:[#allocation4 + $0x68] sm:$0xff] }
  0x93   :  { %v109_v15 = vadd.f32 %v108_v13, %v64_v11  ;;  %v253_v11 = vld [vmem:[#allocation4 + $0x460] sm:$0xff]  ;;  %v254_v13 = vld [vmem:[#allocation4 + $0x468] sm:$0xff] }
  0x94   :  { %v974_v16 = vmax.f32 %v89_v14, 0.0  ;;  %v117_v14 = vld [vmem:[#allocation4 + $0x20] sm:$0xff] }
  0x95   :  { %v976_v17 = vmax.f32 %v109_v15, 0.0  ;;  %v245_v15 = vld [vmem:[#allocation4 + $0x420] sm:$0xff] }
  0x96   :  { %403 = vmatmul.f32.vlgmr.msra.gmra.mxu2 %v974_v16  ;;  %443 = vmatmul.f32.vlgmr.msrb.gmra.mxu0 %v974_v16 }
  0x97   :  { %423 = vmatmul.f32.vlgmr.msra.gmra.mxu3 %v976_v17  ;;  %463 = vmatmul.f32.vlgmr.msrb.gmra.mxu1 %v976_v17 }
  0x98   :  { %547 = vmatpush.msra.mxu2 %v237_v18  ;;  %567 = vmatpush.msra.mxu3 %v365_v19  ;;  %v118_v18 = vld [vmem:[#allocation4 + $0x28] sm:$0xff] }
  0x99   :  { %587 = vmatpush.msrb.mxu0 %v238_v20  ;;  %607 = vmatpush.msrb.mxu1 %v366_v21  ;;  %v246_v19 = vld [vmem:[#allocation4 + $0x428] sm:$0xff]  ;;  %v239_v20 = vld [vmem:[#allocation4 + $0x3f0] sm:$0xff] }
  0x9a   :  { %548 = vmatpush.msra.mxu2 %v229_v22  ;;  %568 = vmatpush.msra.mxu3 %v357_v23  ;;  %v367_v21 = vld [vmem:[#allocation4 + $0x7f0] sm:$0xff]  ;;  %v240_v22 = vld [vmem:[#allocation4 + $0x3f8] sm:$0xff] }
  0x9b   :  { %588 = vmatpush.msrb.mxu0 %v230_v24  ;;  %608 = vmatpush.msrb.mxu1 %v358_v25  ;;  %v368_v23 = vld [vmem:[#allocation4 + $0x7f8] sm:$0xff]  ;;  %v231_v24 = vld [vmem:[#allocation4 + $0x3b0] sm:$0xff] }
  0x9c   :  { %549 = vmatpush.msra.mxu2 %v221_v26  ;;  %569 = vmatpush.msra.mxu3 %v349_v27  ;;  %v359_v25 = vld [vmem:[#allocation4 + $0x7b0] sm:$0xff]  ;;  %v232_v26 = vld [vmem:[#allocation4 + $0x3b8] sm:$0xff] }
  0x9d   :  { %589 = vmatpush.msrb.mxu0 %v222_v28  ;;  %609 = vmatpush.msrb.mxu1 %v350_v29  ;;  %v360_v27 = vld [vmem:[#allocation4 + $0x7b8] sm:$0xff]  ;;  %v223_v28 = vld [vmem:[#allocation4 + $0x370] sm:$0xff] }
  0x9e   :  { %550 = vmatpush.msra.mxu2 %v213_v30  ;;  %570 = vmatpush.msra.mxu3 %v341_v31  ;;  %v351_v29 = vld [vmem:[#allocation4 + $0x770] sm:$0xff]  ;;  %v224_v30 = vld [vmem:[#allocation4 + $0x378] sm:$0xff] }
  0x9f   :  { %590 = vmatpush.msrb.mxu0 %v214_v32  ;;  %610 = vmatpush.msrb.mxu1 %v342_v33  ;;  %v352_v31 = vld [vmem:[#allocation4 + $0x778] sm:$0xff]  ;;  %v215_v32 = vld [vmem:[#allocation4 + $0x330] sm:$0xff] }
  0xa0   :  { %483 = vmatmul.f32.vlgmr.msrb.gmra.mxu2 %v974_v16  ;;  %503 = vmatmul.f32.vlgmr.msrb.gmra.mxu3 %v976_v17  ;;  %v343_v33 = vld [vmem:[#allocation4 + $0x730] sm:$0xff] }
  0xa1   :  { %523 = vmatmul.f32.vlgmr.msra.gmra.mxu0 %v974_v16  ;;  %543 = vmatmul.f32.vlgmr.msra.gmra.mxu1 %v976_v17 }
  0xa2   :  { %551 = vmatpush.msra.mxu2 %v205_v34  ;;  %571 = vmatpush.msra.mxu3 %v333_v35  ;;  %v216_v34 = vld [vmem:[#allocation4 + $0x338] sm:$0xff] }
  0xa3   :  { %591 = vmatpush.msrb.mxu0 %v206_v36  ;;  %611 = vmatpush.msrb.mxu1 %v334_v37  ;;  %v344_v35 = vld [vmem:[#allocation4 + $0x738] sm:$0xff]  ;;  %v207_v36 = vld [vmem:[#allocation4 + $0x2f0] sm:$0xff] }
  0xa4   :  { %552 = vmatpush.msra.mxu2 %v197_v38  ;;  %572 = vmatpush.msra.mxu3 %v325_v39  ;;  %v335_v37 = vld [vmem:[#allocation4 + $0x6f0] sm:$0xff]  ;;  %v208_v38 = vld [vmem:[#allocation4 + $0x2f8] sm:$0xff] }
  0xa5   :  { %592 = vmatpush.msrb.mxu0 %v198_v40  ;;  %612 = vmatpush.msrb.mxu1 %v326_v41  ;;  %v336_v39 = vld [vmem:[#allocation4 + $0x6f8] sm:$0xff]  ;;  %v199_v40 = vld [vmem:[#allocation4 + $0x2b0] sm:$0xff] }
  0xa6   :  { %553 = vmatpush.msra.mxu2 %v189_v42  ;;  %573 = vmatpush.msra.mxu3 %v317_v43  ;;  %v327_v41 = vld [vmem:[#allocation4 + $0x6b0] sm:$0xff]  ;;  %v200_v42 = vld [vmem:[#allocation4 + $0x2b8] sm:$0xff] }
  0xa7   :  { %593 = vmatpush.msrb.mxu0 %v190_v44  ;;  %613 = vmatpush.msrb.mxu1 %v318_v45  ;;  %v328_v43 = vld [vmem:[#allocation4 + $0x6b8] sm:$0xff]  ;;  %v191_v44 = vld [vmem:[#allocation4 + $0x270] sm:$0xff] }
  0xa8   :  { %554 = vmatpush.msra.mxu2 %v181_v46  ;;  %574 = vmatpush.msra.mxu3 %v309_v47  ;;  %v319_v45 = vld [vmem:[#allocation4 + $0x670] sm:$0xff]  ;;  %v192_v46 = vld [vmem:[#allocation4 + $0x278] sm:$0xff] }
  0xa9   :  { %594 = vmatpush.msrb.mxu0 %v182_v48  ;;  %614 = vmatpush.msrb.mxu1 %v310_v49  ;;  %v320_v47 = vld [vmem:[#allocation4 + $0x678] sm:$0xff]  ;;  %v183_v48 = vld [vmem:[#allocation4 + $0x230] sm:$0xff] }
  0xaa   :  { %555 = vmatpush.msra.mxu2 %v173_v50  ;;  %575 = vmatpush.msra.mxu3 %v301_v51  ;;  %v311_v49 = vld [vmem:[#allocation4 + $0x630] sm:$0xff]  ;;  %v184_v50 = vld [vmem:[#allocation4 + $0x238] sm:$0xff] }
  0xab   :  { %595 = vmatpush.msrb.mxu0 %v174_v52  ;;  %615 = vmatpush.msrb.mxu1 %v302_v53  ;;  %v312_v51 = vld [vmem:[#allocation4 + $0x638] sm:$0xff]  ;;  %v175_v52 = vld [vmem:[#allocation4 + $0x1f0] sm:$0xff] }
  0xac   :  { %556 = vmatpush.msra.mxu2 %v165_v54  ;;  %576 = vmatpush.msra.mxu3 %v293_v55  ;;  %v303_v53 = vld [vmem:[#allocation4 + $0x5f0] sm:$0xff]  ;;  %v176_v54 = vld [vmem:[#allocation4 + $0x1f8] sm:$0xff] }
  0xad   :  { %596 = vmatpush.msrb.mxu0 %v166_v56  ;;  %616 = vmatpush.msrb.mxu1 %v294_v57  ;;  %v304_v55 = vld [vmem:[#allocation4 + $0x5f8] sm:$0xff]  ;;  %v167_v56 = vld [vmem:[#allocation4 + $0x1b0] sm:$0xff] }
  0xae   :  { %557 = vmatpush.msra.mxu2 %v157_v58  ;;  %577 = vmatpush.msra.mxu3 %v285_v59  ;;  %v295_v57 = vld [vmem:[#allocation4 + $0x5b0] sm:$0xff]  ;;  %v168_v58 = vld [vmem:[#allocation4 + $0x1b8] sm:$0xff] }
  0xaf   :  { %597 = vmatpush.msrb.mxu0 %v158_v60  ;;  %617 = vmatpush.msrb.mxu1 %v286_v61  ;;  %v296_v59 = vld [vmem:[#allocation4 + $0x5b8] sm:$0xff]  ;;  %v159_v60 = vld [vmem:[#allocation4 + $0x170] sm:$0xff] }
  0xb0   :  { %558 = vmatpush.msra.mxu2 %v149_v62  ;;  %578 = vmatpush.msra.mxu3 %v277_v63  ;;  %v287_v61 = vld [vmem:[#allocation4 + $0x570] sm:$0xff]  ;;  %v160_v62 = vld [vmem:[#allocation4 + $0x178] sm:$0xff] }
  0xb1   :  { %598 = vmatpush.msrb.mxu0 %v150_v0  ;;  %618 = vmatpush.msrb.mxu1 %v278_v1  ;;  %v288_v63 = vld [vmem:[#allocation4 + $0x578] sm:$0xff]  ;;  %v151_v0 = vld [vmem:[#allocation4 + $0x130] sm:$0xff] }
  0xb2   :  { %559 = vmatpush.msra.mxu2 %v141_v2  ;;  %579 = vmatpush.msra.mxu3 %v269_v3  ;;  %v279_v1 = vld [vmem:[#allocation4 + $0x530] sm:$0xff]  ;;  %v152_v2 = vld [vmem:[#allocation4 + $0x138] sm:$0xff] }
  0xb3   :  { %599 = vmatpush.msrb.mxu0 %v142_v4  ;;  %619 = vmatpush.msrb.mxu1 %v270_v5  ;;  %v280_v3 = vld [vmem:[#allocation4 + $0x538] sm:$0xff]  ;;  %v143_v4 = vld [vmem:[#allocation4 + $0xf0] sm:$0xff] }
  0xb4   :  { %560 = vmatpush.msra.mxu2 %v133_v6  ;;  %580 = vmatpush.msra.mxu3 %v261_v7  ;;  %v271_v5 = vld [vmem:[#allocation4 + $0x4f0] sm:$0xff]  ;;  %v144_v6 = vld [vmem:[#allocation4 + $0xf8] sm:$0xff] }
  0xb5   :  { %600 = vmatpush.msrb.mxu0 %v134_v8  ;;  %620 = vmatpush.msrb.mxu1 %v262_v9  ;;  %v272_v7 = vld [vmem:[#allocation4 + $0x4f8] sm:$0xff]  ;;  %v135_v8 = vld [vmem:[#allocation4 + $0xb0] sm:$0xff] }
  0xb6   :  { %561 = vmatpush.msra.mxu2 %v125_v10  ;;  %581 = vmatpush.msra.mxu3 %v253_v11  ;;  %v263_v9 = vld [vmem:[#allocation4 + $0x4b0] sm:$0xff]  ;;  %v136_v10 = vld [vmem:[#allocation4 + $0xb8] sm:$0xff] }
  0xb7   :  { %601 = vmatpush.msrb.mxu0 %v126_v12  ;;  %621 = vmatpush.msrb.mxu1 %v254_v13  ;;  %v264_v11 = vld [vmem:[#allocation4 + $0x4b8] sm:$0xff]  ;;  %v127_v12 = vld [vmem:[#allocation4 + $0x70] sm:$0xff] }
  0xb8   :  { %562 = vmatpush.msra.mxu2 %v117_v14  ;;  %582 = vmatpush.msra.mxu3 %v245_v15  ;;  %v255_v13 = vld [vmem:[#allocation4 + $0x470] sm:$0xff]  ;;  %v128_v14 = vld [vmem:[#allocation4 + $0x78] sm:$0xff] }
  0xb9   :  { %602 = vmatpush.msrb.mxu0 %v118_v18  ;;  %622 = vmatpush.msrb.mxu1 %v246_v19  ;;  %v256_v15 = vld [vmem:[#allocation4 + $0x478] sm:$0xff]  ;;  %v119_v18 = vld [vmem:[#allocation4 + $0x30] sm:$0xff] }
  0xba   :  { %563 = vmatmul.f32.vlgmr.msra.gmra.mxu2 %v974_v16  ;;  %583 = vmatmul.f32.vlgmr.msra.gmra.mxu3 %v976_v17  ;;  %v247_v19 = vld [vmem:[#allocation4 + $0x430] sm:$0xff] }
  0xbb   :  { %603 = vmatmul.f32.vlgmr.msrb.gmra.mxu0 %v974_v16  ;;  %623 = vmatmul.f32.vlgmr.msrb.gmra.mxu1 %v976_v17 }
  0xbc   :  { %627 = vmatpush.msrb.mxu2 %v239_v20  ;;  %647 = vmatpush.msrb.mxu3 %v367_v21  ;;  %v120_v20 = vld [vmem:[#allocation4 + $0x38] sm:$0xff] }
  0xbd   :  { %667 = vmatpush.msra.mxu0 %v240_v22  ;;  %687 = vmatpush.msra.mxu1 %v368_v23  ;;  %v248_v21 = vld [vmem:[#allocation4 + $0x438] sm:$0xff]  ;;  %v707_v22 = vlaneseq }
  0xbe   :  { %628 = vmatpush.msrb.mxu2 %v231_v24  ;;  %648 = vmatpush.msrb.mxu3 %v359_v25  ;;  %v1000_v25 = vld [vmem:[%s1046_s4] sm:$0xff] }
  0xbf   :  { %668 = vmatpush.msra.mxu0 %v232_v26  ;;  %688 = vmatpush.msra.mxu1 %v360_v27  ;;  %v994_v23 = vand.u32 127, %v707_v22  ;;  %v372_v26 = vperm.slane %v1000_v25, 1 }
  0xc0   :  { %629 = vmatpush.msrb.mxu2 %v223_v28  ;;  %649 = vmatpush.msrb.mxu3 %v351_v29 }
  0xc1   :  { %669 = vmatpush.msra.mxu0 %v224_v30  ;;  %689 = vmatpush.msra.mxu1 %v352_v31  ;;  %v709_v24 = vadd.s32 128, %v994_v23  ;;  %v711_v31 = vadd.s32 384, %v994_v23  ;;  %vm812_vm4 = vcmp.ge.s32.totalorder %v994_v23, 11  ;;  %vm820_vm5 = vcmp.lt.s32.totalorder %v994_v23, 43 }
  0xc2   :  { %630 = vmatpush.msrb.mxu2 %v215_v32  ;;  %650 = vmatpush.msrb.mxu3 %v343_v33  ;;  %vm828_vm6 = vmand %vm812_vm4, %vm820_vm5 }
  0xc3   :  { %670 = vmatpush.msra.mxu0 %v216_v34  ;;  %690 = vmatpush.msra.mxu1 %v344_v35  ;;  %v727_v27 = vand.u32 127, %v709_v24 }
  0xc4   :  { %631 = vmatpush.msrb.mxu2 %v207_v36  ;;  %651 = vmatpush.msrb.mxu3 %v335_v37  ;;  %v374_v37 = vperm.slane %v1000_v25, 3 }
  0xc5   :  { %671 = vmatpush.msra.mxu0 %v208_v38  ;;  %691 = vmatpush.msra.mxu1 %v336_v39  ;;  %vm813_vm1 = vcmp.ge.s32.totalorder %v727_v27, 11  ;;  %vm821_vm2 = vcmp.lt.s32.totalorder %v727_v27, 43  ;;  %v741_v38 = vand.u32 127, %v711_v31 }
  0xc6   :  { %632 = vmatpush.msrb.mxu2 %v199_v40  ;;  %652 = vmatpush.msrb.mxu3 %v327_v41  ;;  %vm829_vm3 = vmand %vm813_vm1, %vm821_vm2  ;;  %v710_v40 = vadd.s32 256, %v994_v23 }
  0xc7   :  { %672 = vmatpush.msra.mxu0 %v200_v42  ;;  %692 = vmatpush.msra.mxu1 %v328_v43  ;;  %vm815_vm7 = vcmp.ge.s32.totalorder %v741_v38, 11  ;;  %vm823_vm8 = vcmp.lt.s32.totalorder %v741_v38, 43 }
  0xc8   :  { %633 = vmatpush.msrb.mxu2 %v191_v44  ;;  %653 = vmatpush.msrb.mxu3 %v319_v45  ;;  %vm831_vm9 = vmand %vm815_vm7, %vm823_vm8 }
  0xc9   :  { %673 = vmatpush.msra.mxu0 %v192_v46  ;;  %693 = vmatpush.msra.mxu1 %v320_v47  ;;  %v373_v46 = vperm.slane %v1000_v25, 2  ;;  %v734_v47 = vand.u32 127, %v710_v40 }
  0xca   :  { %634 = vmatpush.msrb.mxu2 %v183_v48  ;;  %654 = vmatpush.msrb.mxu3 %v311_v49 }
  0xcb   :  { %674 = vmatpush.msra.mxu0 %v184_v50  ;;  %694 = vmatpush.msra.mxu1 %v312_v51  ;;  %vm814_vm10 = vcmp.ge.s32.totalorder %v734_v47, 11  ;;  %vm822_vm11 = vcmp.lt.s32.totalorder %v734_v47, 43 }
  0xcc   :  { %635 = vmatpush.msrb.mxu2 %v175_v52  ;;  %655 = vmatpush.msrb.mxu3 %v303_v53  ;;  %vm830_vm12 = vmand %vm814_vm10, %vm822_vm11 }
  0xcd   :  { %675 = vmatpush.msra.mxu0 %v176_v54  ;;  %695 = vmatpush.msra.mxu1 %v304_v55 }
  0xce   :  { %636 = vmatpush.msrb.mxu2 %v167_v56  ;;  %656 = vmatpush.msrb.mxu3 %v295_v57  ;;  %v713_v57 = vadd.s32 640, %v994_v23 }
  0xcf   :  { %676 = vmatpush.msra.mxu0 %v168_v58  ;;  %696 = vmatpush.msra.mxu1 %v296_v59  ;;  %v376_v58 = vperm.slane %v1000_v25, 5 }
  0xd0   :  { %637 = vmatpush.msrb.mxu2 %v159_v60  ;;  %657 = vmatpush.msrb.mxu3 %v287_v61  ;;  %v755_v59 = vand.u32 127, %v713_v57  ;;  %v712_v60 = vadd.s32 512, %v994_v23 }
  0xd1   :  { %677 = vmatpush.msra.mxu0 %v160_v62  ;;  %697 = vmatpush.msra.mxu1 %v288_v63 }
  0xd2   :  { %638 = vmatpush.msrb.mxu2 %v151_v0  ;;  %658 = vmatpush.msrb.mxu3 %v279_v1  ;;  %vm817_vm13 = vcmp.ge.s32.totalorder %v755_v59, 11  ;;  %vm825_vm14 = vcmp.lt.s32.totalorder %v755_v59, 43  ;;  %v375_v0 = vperm.slane %v1000_v25, 4  ;;  %v748_v1 = vand.u32 127, %v712_v60 }
  0xd3   :  { %678 = vmatpush.msra.mxu0 %v152_v2  ;;  %698 = vmatpush.msra.mxu1 %v280_v3  ;;  %vm833_vm15 = vmand %vm817_vm13, %vm825_vm14 }
  0xd4   :  { %639 = vmatpush.msrb.mxu2 %v143_v4  ;;  %659 = vmatpush.msrb.mxu3 %v271_v5  ;;  %vm816_vm0 = vcmp.ge.s32.totalorder %v748_v1, 11  ;;  %vm824_vm1 = vcmp.lt.s32.totalorder %v748_v1, 43 }
  0xd5   :  { %679 = vmatpush.msra.mxu0 %v144_v6  ;;  %699 = vmatpush.msra.mxu1 %v272_v7  ;;  %vm832_vm2 = vmand %vm816_vm0, %vm824_vm1 }
  0xd6   :  { %640 = vmatpush.msrb.mxu2 %v135_v8  ;;  %660 = vmatpush.msrb.mxu3 %v263_v9 }
  0xd7   :  { %680 = vmatpush.msra.mxu0 %v136_v10  ;;  %700 = vmatpush.msra.mxu1 %v264_v11  ;;  %v715_v11 = vadd.s32 896, %v994_v23 }
  0xd8   :  { %641 = vmatpush.msrb.mxu2 %v127_v12  ;;  %661 = vmatpush.msrb.mxu3 %v255_v13  ;;  %v378_v12 = vperm.slane %v1000_v25, 7 }
  0xd9   :  { %681 = vmatpush.msra.mxu0 %v128_v14  ;;  %701 = vmatpush.msra.mxu1 %v256_v15  ;;  %v769_v13 = vand.u32 127, %v715_v11  ;;  %v714_v14 = vadd.s32 768, %v994_v23 }
  0xda   :  { %642 = vmatpush.msrb.mxu2 %v119_v18  ;;  %662 = vmatpush.msrb.mxu3 %v247_v19 }
  0xdb   :  { %682 = vmatpush.msra.mxu0 %v120_v20  ;;  %702 = vmatpush.msra.mxu1 %v248_v21  ;;  %vm827_vm4 = vcmp.lt.s32.totalorder %v769_v13, 43  ;;  %v377_v20 = vperm.slane %v1000_v25, 6  ;;  %v762_v21 = vand.u32 127, %v714_v14 }
  0xdc   :  { %643 = vmatmul.f32.vlgmr.msrb.gmra.mxu2 %v974_v16  ;;  %663 = vmatmul.f32.vlgmr.msrb.gmra.mxu3 %v976_v17 }
  0xdd   :  { %683 = vmatmul.f32.vlgmr.msra.gmra.mxu0 %v974_v16  ;;  %703 = vmatmul.f32.vlgmr.msra.gmra.mxu1 %v976_v17  ;;  %v371_v17 = vperm.slane %v1000_v25, 0  ;;  %vm826_vm7 = vcmp.lt.s32.totalorder %v762_v21, 43 }
 0x113   :  { %v444_v28 = vpop.f32.mrf.mxu0 }
 0x114   :  { %v445_v29 = vadd.f32 %v444_v28, %v372_v26  ;;  %v464_v16 = vpop.f32.mrf.mxu1 }
 0x116   :  { %v465_v30 = vadd.f32 %v464_v16, %v445_v29 }
 0x118   :  { %v837_v32 = vmax.f32 %v465_v30, 0.0 }
 0x119   :  { %v404_v33 = vpop.f32.mrf.mxu2 }
 0x11a   :  { %v405_v34 = vadd.f32 %v404_v33, %v371_v17  ;;  %v845_v35 = vsel %vm829_vm3, %v837_v32, %v465_v30  ;;  %v424_v36 = vpop.f32.mrf.mxu3  ;;  %vm819_vm3 = vcmp.ge.s32.totalorder %v769_v13, 11 }
 0x11b   :  { %853 = vst [vmem:[%s1047_s5 + $0x8] sm:$0xff] %v845_v35  ;;  %vm835_vm5 = vmand %vm819_vm3, %vm827_vm4 }
 0x11c   :  { %v425_v39 = vadd.f32 %v424_v36, %v405_v34 }
 0x11e   :  { %v836_v41 = vmax.f32 %v425_v39, 0.0  ;;  %v524_v42 = vpop.f32.mrf.mxu0  ;;  %v544_v45 = vpop.f32.mrf.mxu1 }
 0x11f   :  { %v525_v43 = vadd.f32 %v524_v42, %v374_v37 }
 0x120   :  { %v844_v44 = vsel %vm828_vm6, %v836_v41, %v425_v39  ;;  %vm818_vm6 = vcmp.ge.s32.totalorder %v762_v21, 11 }
 0x121   :  { %852 = vst [vmem:[%s1047_s5] sm:$0xff] %v844_v44  ;;  %v545_v48 = vadd.f32 %v544_v45, %v525_v43  ;;  %vm834_vm8 = vmand %vm818_vm6, %vm826_vm7 }
 0x123   :  { %v839_v49 = vmax.f32 %v545_v48, 0.0  ;;  %v484_v50 = vpop.f32.mrf.mxu2  ;;  %v504_v53 = vpop.f32.mrf.mxu3 }
 0x124   :  { %v485_v51 = vadd.f32 %v484_v50, %v373_v46 }
 0x125   :  { %v847_v52 = vsel %vm831_vm9, %v839_v49, %v545_v48 }
 0x126   :  { %855 = vst [vmem:[%s1047_s5 + $0x18] sm:$0xff] %v847_v52  ;;  %v505_v54 = vadd.f32 %v504_v53, %v485_v51 }
 0x128   :  { %v838_v55 = vmax.f32 %v505_v54, 0.0 }
 0x12a   :  { %v846_v56 = vsel %vm830_vm12, %v838_v55, %v505_v54 }
 0x12b   :  { %854 = vst [vmem:[%s1047_s5 + $0x10] sm:$0xff] %v846_v56 }
 0x138   :  { %v604_v61 = vpop.f32.mrf.mxu0  ;;  %v624_v63 = vpop.f32.mrf.mxu1 }
 0x139   :  { %v605_v62 = vadd.f32 %v604_v61, %v376_v58 }
 0x13b   :  { %v625_v2 = vadd.f32 %v624_v63, %v605_v62 }
 0x13d   :  { %v841_v3 = vmax.f32 %v625_v2, 0.0  ;;  %v564_v4 = vpop.f32.mrf.mxu2  ;;  %v584_v7 = vpop.f32.mrf.mxu3 }
 0x13e   :  { %v565_v5 = vadd.f32 %v564_v4, %v375_v0 }
 0x13f   :  { %v849_v6 = vsel %vm833_vm15, %v841_v3, %v625_v2 }
 0x140   :  { %857 = vst [vmem:[%s1047_s5 + $0x28] sm:$0xff] %v849_v6  ;;  %v585_v8 = vadd.f32 %v584_v7, %v565_v5 }
 0x142   :  { %v840_v9 = vmax.f32 %v585_v8, 0.0 }
 0x144   :  { %v848_v10 = vsel %vm832_vm2, %v840_v9, %v585_v8 }
 0x145   :  { %856 = vst [vmem:[%s1047_s5 + $0x20] sm:$0xff] %v848_v10 }
 0x15a   :  { %v684_v15 = vpop.f32.mrf.mxu0  ;;  %v704_v19 = vpop.f32.mrf.mxu1 }
 0x15b   :  { %v685_v18 = vadd.f32 %v684_v15, %v378_v12 }
 0x15d   :  { %v705_v22 = vadd.f32 %v704_v19, %v685_v18 }
 0x15f   :  { %v843_v24 = vmax.f32 %v705_v22, 0.0  ;;  %v644_v26 = vpop.f32.mrf.mxu2  ;;  %v664_v29 = vpop.f32.mrf.mxu3 }
 0x160   :  { %v645_v27 = vadd.f32 %v644_v26, %v377_v20 }
 0x161   :  { %v851_v28 = vsel %vm835_vm5, %v843_v24, %v705_v22 }
 0x162   :  { %859 = vst [vmem:[%s1047_s5 + $0x38] sm:$0xff] %v851_v28  ;;  %v665_v23 = vadd.f32 %v664_v29, %v645_v27 }
 0x164   :  { %v842_v16 = vmax.f32 %v665_v23, 0.0 }
 0x166   :  { %v850_v17 = vsel %vm834_vm8, %v842_v16, %v665_v23 }
 0x167   :  { %858 = vst [vmem:[%s1047_s5 + $0x30] sm:$0xff] %v850_v17 }
 0x168   :  { %864 = vsyncpa [#allocation3], 1 }
 0x169   :  { %865 = vsyncpa [#allocation5], 1 }

</bundles_post_ra>
